<compile_context>
chip_gen: v5e
topology: v5e:2x2
jax: 0.10.0
libtpu: 0.0.40
codegen_flags: <defaults>
</compile_context>

<pallas_src>
import math

import jax
import jax.numpy as jnp
from jax.experimental import pallas as pl
from jax.experimental.pallas import tpu as pltpu


def _make_scale_kernel(scale_factor: float):
    def kernel(x_ref, o_ref):
        o_ref[...] = x_ref[...] * jnp.asarray(scale_factor, x_ref.dtype)
    return kernel


def uniform_box_warp(
    coordinates: jax.Array,
    sidelength: float,
    *,
    block_rows: int = 512,
    lanes: int = 1024,
) -> jax.Array:
    """Pallas equivalent of UniformBoxWarp(sidelength)(coordinates).

    Flattens the input to a lane-dense (rows, lanes) slab, scales it with
    large blocks, then restores the original shape. Works for any shape.
    """
    scale_factor = 2.0 / sidelength
    dtype = coordinates.dtype
    orig_shape = coordinates.shape
    total = math.prod(orig_shape) if orig_shape else 1

    SUB = 16  # sublane multiple valid for both f32 (8) and bf16 (16)

    # Rows needed at `lanes` width, then pick a block height that is a multiple
    # of SUB but never larger than the (sub-aligned) data itself.
    rows = pl.cdiv(total, lanes)
    br = max(SUB, min(block_rows, pl.cdiv(rows, SUB) * SUB))
    br = (br // SUB) * SUB
    padded_rows = pl.cdiv(rows, br) * br
    padded_total = padded_rows * lanes

    flat = coordinates.reshape(-1)
    if padded_total != total:
        flat = jnp.pad(flat, (0, padded_total - total))
    x2d = flat.reshape(padded_rows, lanes)

    kernel = _make_scale_kernel(scale_factor)

    out2d = pl.pallas_call(
        kernel,
        out_shape=jax.ShapeDtypeStruct((padded_rows, lanes), dtype),
        grid=(padded_rows // br,),
        in_specs=[pl.BlockSpec((br, lanes), lambda i: (i, 0))],
        out_specs=pl.BlockSpec((br, lanes), lambda i: (i, 0)),
        compiler_params=pltpu.CompilerParams(
            dimension_semantics=("parallel",),
        ),
    )(x2d)

    return out2d.reshape(-1)[:total].reshape(orig_shape)


if __name__ == "__main__":
    key = jax.random.PRNGKey(0)
    B, N, C = 2, 256, 3          # small: batch=2, 256 points, 3-D coordinates
    sidelength = 0.24            # typical value used with this module in cgof

    coordinates = jax.random.uniform(
        key, (B, N, C), dtype=jnp.float32, minval=-0.12, maxval=0.12
    )

    out = uniform_box_warp(coordinates, sidelength)
    out = jax.block_until_ready(out)

    # Reference check (plain JAX)
    ref = coordinates * (2.0 / sidelength)
    assert out.shape == (B, N, C)
    assert out.dtype == coordinates.dtype
    assert jnp.allclose(out, ref, atol=1e-6, rtol=1e-6)

    print("KERNEL_OK")
</pallas_src>

<mosaic_0001>
module attributes {stable_mosaic.version = 11 : i64} {
  func.func @kernel(%arg0: i32, %arg1: memref<16x1024xf32, #tpu.memory_space<vmem>>, %arg2: memref<16x1024xf32, #tpu.memory_space<vmem>>) attributes {dimension_semantics = [#tpu.dimension_semantics<parallel>], iteration_bounds = array<i64: 1>, scalar_prefetch = 0 : i64, scratch_operands = 0 : i64, tpu.core_type = #tpu.core_type<tc>, window_params = [{transform_indices = @transform_0, window_bounds = array<i64: 16, 1024>}, {transform_indices = @transform_1, window_bounds = array<i64: 16, 1024>}]} {
    %c0 = arith.constant 0 : index
    %c0_0 = arith.constant 0 : index
    %0 = vector.load %arg1[%c0, %c0_0] : memref<16x1024xf32, #tpu.memory_space<vmem>>, vector<16x1024xf32>
    %cst = arith.constant 8.33333301 : f32
    %1 = vector.broadcast %cst : f32 to vector<16x1024xf32>
    %2 = arith.mulf %0, %1 : vector<16x1024xf32>
    %c0_1 = arith.constant 0 : index
    %c0_2 = arith.constant 0 : index
    %3 = vector.load %arg2[%c0_1, %c0_2] : memref<16x1024xf32, #tpu.memory_space<vmem>>, vector<16x1024xf32>
    tpu.vector_store %arg2[%c0_1, %c0_2], %2 {strides = array<i32>} : memref<16x1024xf32, #tpu.memory_space<vmem>>, vector<16x1024xf32>,
    return
  }
  func.func @transform_0(%arg0: i32) -> (i32, i32) {
    %c0_i32 = arith.constant 0 : i32
    %c0_i32_0 = arith.constant 0 : i32
    return %arg0, %c0_i32 : i32, i32
  }
  func.func @transform_1(%arg0: i32) -> (i32, i32) {
    %c0_i32 = arith.constant 0 : i32
    %c0_i32_0 = arith.constant 0 : i32
    return %arg0, %c0_i32 : i32, i32
  }
}

</mosaic_0001>

<bundles_post_ra>
// kernel: tpu_custom_call.1
= control target key start
LH: loop header
LB: loop body
LE: loop exit
PB: predicated region body
PF: predicated region fallthrough
CT: control target
= control target key end

     0   :  { %6 = vsyncpa [#allocation3], 0  ;;  %s174_s0 = inlined_call_operand.hbm [shape: f32[16,1024], index: 0, kind: input, shape index: {}]   ;;  %s175_s1 = inlined_call_operand.hbm [shape: f32[16,1024], index: 1, kind: output, shape index: {}]  }
   0x1   :  { %7 = vsyncpa [#allocation4], 0  ;;  %s12_s8 = sshll.u32 %s174_s0, 4  ;;  %s148_s9 = smov [#allocation2]   ;;  %s13_s8 = int_to_ptr.hbm [resolvable:$true] %s12_s8 }
   0x2   :  { %s14_s10 = sshll.u32 %s148_s9, 4  ;;  %s149_s11 = smov 1024   ;;  %s15_s10 = int_to_ptr.vmem [resolvable:$true] %s14_s10 }
   0x3   :  { %s150_s12 = smov 64  }
   0x4   :  { %20 = dma.hbm_to_vmem [thread:$0]  %s13_s8, 2048, %s15_s10, [#allocation3], %s149_s11, %s149_s11, %s150_s12  }
   0x5   :  { %144 = dma.done.wait [#allocation3], 2048  }
   0x6   :  { %145 = vsyncadd [#allocation3], 4294965248  ;;  %v25_v0 = vld [vmem:[#allocation2] sm:$0xff]  ;;  %v26_v1 = vld [vmem:[#allocation2 + $0x8] sm:$0xff]  ;;  %s151_s0 = smov [#allocation5]   ;;  %s79_s16 = sshll.u32 %s175_s1, 4  ;;  %s80_s16 = int_to_ptr.hbm [resolvable:$true] %s79_s16 }
   0x7   :  { %v27_v2 = vld [vmem:[#allocation2 + $0x10] sm:$0xff]  ;;  %v41_v3 = vmul.f32 8.333333, %v25_v0  ;;  %v42_v4 = vmul.f32 8.333333, %v26_v1  ;;  %v28_v6 = vld [vmem:[#allocation2 + $0x18] sm:$0xff] }
   0x8   :  { %v43_v5 = vmul.f32 8.333333, %v27_v2  ;;  %v29_v7 = vld [vmem:[#allocation2 + $0x20] sm:$0xff]  ;;  %v30_v8 = vld [vmem:[#allocation2 + $0x28] sm:$0xff]  ;;  %v44_v9 = vmul.f32 8.333333, %v28_v6 }
   0x9   :  { %57 = vst [vmem:[#allocation5] sm:$0xff] %v41_v3  ;;  %v45_v10 = vmul.f32 8.333333, %v29_v7  ;;  %v31_v11 = vld [vmem:[#allocation2 + $0x30] sm:$0xff]  ;;  %v46_v12 = vmul.f32 8.333333, %v30_v8 }
   0xa   :  { %58 = vst [vmem:[#allocation5 + $0x8] sm:$0xff] %v42_v4  ;;  %v32_v13 = vld [vmem:[#allocation2 + $0x38] sm:$0xff]  ;;  %v47_v14 = vmul.f32 8.333333, %v31_v11  ;;  %v33_v15 = vld [vmem:[#allocation2 + $0x40] sm:$0xff]  ;;  %v34_v16 = vld [vmem:[#allocation2 + $0x48] sm:$0xff] }
   0xb   :  { %59 = vst [vmem:[#allocation5 + $0x10] sm:$0xff] %v43_v5  ;;  %v48_v17 = vmul.f32 8.333333, %v32_v13  ;;  %v35_v18 = vld [vmem:[#allocation2 + $0x50] sm:$0xff]  ;;  %v49_v19 = vmul.f32 8.333333, %v33_v15 }
   0xc   :  { %60 = vst [vmem:[#allocation5 + $0x18] sm:$0xff] %v44_v9  ;;  %v36_v20 = vld [vmem:[#allocation2 + $0x58] sm:$0xff]  ;;  %v50_v21 = vmul.f32 8.333333, %v34_v16  ;;  %v37_v22 = vld [vmem:[#allocation2 + $0x60] sm:$0xff]  ;;  %v38_v24 = vld [vmem:[#allocation2 + $0x68] sm:$0xff] }
   0xd   :  { %61 = vst [vmem:[#allocation5 + $0x20] sm:$0xff] %v45_v10  ;;  %v51_v23 = vmul.f32 8.333333, %v35_v18  ;;  %v52_v25 = vmul.f32 8.333333, %v36_v20  ;;  %v39_v26 = vld [vmem:[#allocation2 + $0x70] sm:$0xff] }
   0xe   :  { %62 = vst [vmem:[#allocation5 + $0x28] sm:$0xff] %v46_v12  ;;  %v53_v27 = vmul.f32 8.333333, %v37_v22  ;;  %v40_v28 = vld [vmem:[#allocation2 + $0x78] sm:$0xff]  ;;  %v54_v29 = vmul.f32 8.333333, %v38_v24 }
   0xf   :  { %63 = vst [vmem:[#allocation5 + $0x30] sm:$0xff] %v47_v14  ;;  %v55_v30 = vmul.f32 8.333333, %v39_v26  ;;  %s77_s13 = sshll.u32 %s151_s0, 4  ;;  %v56_v31 = vmul.f32 8.333333, %v40_v28  ;;  %s78_s13 = int_to_ptr.vmem [resolvable:$true] %s77_s13 }
  0x10   :  { %64 = vst [vmem:[#allocation5 + $0x38] sm:$0xff] %v48_v17 }
  0x11   :  { %65 = vst [vmem:[#allocation5 + $0x40] sm:$0xff] %v49_v19 }
  0x12   :  { %66 = vst [vmem:[#allocation5 + $0x48] sm:$0xff] %v50_v21 }
  0x13   :  { %67 = vst [vmem:[#allocation5 + $0x50] sm:$0xff] %v51_v23 }
  0x14   :  { %68 = vst [vmem:[#allocation5 + $0x58] sm:$0xff] %v52_v25 }
  0x15   :  { %69 = vst [vmem:[#allocation5 + $0x60] sm:$0xff] %v53_v27 }
  0x16   :  { %70 = vst [vmem:[#allocation5 + $0x68] sm:$0xff] %v54_v29 }
  0x17   :  { %71 = vst [vmem:[#allocation5 + $0x70] sm:$0xff] %v55_v30 }
  0x18   :  { %72 = vst [vmem:[#allocation5 + $0x78] sm:$0xff] %v56_v31 }
  0x19   :  { %85 = dma.vmem_to_hbm [thread:$0]  %s78_s13, 2048, %s80_s16, [#allocation4], %s149_s11, %s149_s11, %s150_s12  }
  0x1a   :  { %146 = dma.done.wait [#allocation4], 2048  }
  0x1b   :  { %147 = vsyncadd [#allocation4], 4294965248 }
  0x1c   :  { %90 = vsyncpa [#allocation3], 1 }
  0x1d   :  { %91 = vsyncpa [#allocation4], 1 }

</bundles_post_ra>
